<compile_context>
chip_gen: v6e
topology: v6e:2x2x1
jax: 0.10.0
libtpu: 0.0.40
codegen_flags: <defaults>
</compile_context>

<pallas_src>
import functools

import jax
import jax.numpy as jnp
from jax.experimental import pallas as pl
from jax.experimental.pallas import tpu as pltpu

_PAIRWISE_EPS = 1e-6  # matches torch.nn.functional.pairwise_distance default


def _triplet_sum_kernel(anchor_ref, neg_ref, nn_ref, out_ref, acc_ref,
                        *, margin, batch, tile_b):
    i = pl.program_id(0)

    @pl.when(i == 0)
    def _init():
        acc_ref[0, 0] = jnp.float32(0.0)

    # Upcast to f32 for compute (inputs may be bf16 storage).
    anc = anchor_ref[...].astype(jnp.float32)   # (tile_b, D)
    neg = neg_ref[...].astype(jnp.float32)      # (tile_b, D) -> triplet "anchor"
    pos = nn_ref[...].astype(jnp.float32)       # (tile_b, D) -> triplet "positive"

    # d(x, y) = || x - y + eps ||_2  (PyTorch pairwise_distance convention)
    diff_ap = neg - pos + _PAIRWISE_EPS
    diff_an = neg - anc + _PAIRWISE_EPS
    d_ap = jnp.sqrt(jnp.sum(diff_ap * diff_ap, axis=-1, keepdims=True))  # (tile_b, 1)
    d_an = jnp.sqrt(jnp.sum(diff_an * diff_an, axis=-1, keepdims=True))  # (tile_b, 1)

    per_row = jnp.maximum(d_ap - d_an + jnp.float32(margin), 0.0)        # (tile_b, 1)

    # Mask padded rows of the last (partial) tile so the mean uses the true B.
    row_ids = i * tile_b + jax.lax.broadcasted_iota(jnp.int32, per_row.shape, 0)
    per_row = jnp.where(row_ids < batch, per_row, 0.0)

    acc_ref[0, 0] += jnp.sum(per_row)

    @pl.when(i == pl.num_programs(0) - 1)
    def _finalize():
        out_ref[0, 0] = acc_ref[0, 0] / jnp.float32(batch)


def _choose_tile_b(batch, feat_dim, itemsize):
    """Biggest batch tile such that 3 inputs x 2 pipeline buffers stay ~<=24 MiB."""
    budget_bytes = 24 * 1024 * 1024
    per_row_bytes = 3 * 2 * feat_dim * itemsize
    tile = budget_bytes // max(per_row_bytes, 1)
    tile = int(max(8, min(tile, 2048)))
    tile -= tile % 8                      # sublane-aligned
    if tile >= batch:
        return batch                      # single full-extent block (always legal)
    return max(tile, 8)


def triplet_margin_loss_mean(embed_anchor, embed_neg, embed_nn, *, margin,
                             tile_b=None):
    """mean(relu(||neg-nn+eps|| - ||neg-anchor+eps|| + margin)) via Pallas."""
    B, D = embed_anchor.shape
    itemsize = jnp.dtype(embed_anchor.dtype).itemsize
    if tile_b is None:
        tile_b = _choose_tile_b(B, D, itemsize)
    grid = (pl.cdiv(B, tile_b),)

    kernel = functools.partial(
        _triplet_sum_kernel, margin=float(margin), batch=int(B), tile_b=int(tile_b))

    emb_spec = pl.BlockSpec((tile_b, D), lambda i: (i, 0))

    out = pl.pallas_call(
        kernel,
        out_shape=jax.ShapeDtypeStruct((1, 1), jnp.float32),
        grid=grid,
        in_specs=[emb_spec, emb_spec, emb_spec],
        out_specs=pl.BlockSpec(memory_space=pltpu.SMEM),
        scratch_shapes=[pltpu.SMEM((1, 1), jnp.float32)],
        compiler_params=pltpu.CompilerParams(
            dimension_semantics=("arbitrary",),      # accumulator axis
            vmem_limit_bytes=48 * 1024 * 1024,
        ),
    )(embed_anchor, embed_neg, embed_nn)
    return out[0, 0]


def myloss_two(embed_anchor, embed_neg, embed_nn, dis_two,
               *, alpha1, alpha2, margin, tile_b=None):
    """JAX/Pallas equivalent of MyLoss_two.forward. Returns a scalar f32."""
    loss_tml = triplet_margin_loss_mean(
        embed_anchor, embed_neg, embed_nn, margin=margin, tile_b=tile_b)
    # O(B) lane-sparse reduction: keep it in plain XLA (perf review item).
    loss_dis = jnp.mean(dis_two.astype(jnp.float32))
    return alpha1 * loss_tml + alpha2 * loss_dis


def _reference(embed_anchor, embed_neg, embed_nn, dis_two,
               *, alpha1, alpha2, margin):
    a = embed_anchor.astype(jnp.float32)
    n = embed_neg.astype(jnp.float32)
    p = embed_nn.astype(jnp.float32)
    d_ap = jnp.linalg.norm(n - p + _PAIRWISE_EPS, axis=-1)
    d_an = jnp.linalg.norm(n - a + _PAIRWISE_EPS, axis=-1)
    loss_tml = jnp.mean(jnp.maximum(d_ap - d_an + margin, 0.0))
    return alpha1 * loss_tml + alpha2 * jnp.mean(dis_two.astype(jnp.float32))


if __name__ == "__main__":
    key = jax.random.PRNGKey(0)

    # Case 1: f32 embeddings, batch not divisible by the tile -> exercises the
    # multi-tile accumulator path and the remainder-row mask.
    B, D = 200, 64
    alpha1, alpha2, margin = 1.0, 0.5, 2.0
    k1, k2, k3, k4, k5, k6, k7, k8 = jax.random.split(key, 8)
    embed_anchor = jax.random.normal(k1, (B, D), dtype=jnp.float32)
    embed_neg = jax.random.normal(k2, (B, D), dtype=jnp.float32)
    embed_nn = jax.random.normal(k3, (B, D), dtype=jnp.float32)
    dis_two = jax.random.uniform(k4, (B,), dtype=jnp.float32)

    loss = myloss_two(embed_anchor, embed_neg, embed_nn, dis_two,
                      alpha1=alpha1, alpha2=alpha2, margin=margin, tile_b=64)
    loss = jax.block_until_ready(loss)
    ref = _reference(embed_anchor, embed_neg, embed_nn, dis_two,
                     alpha1=alpha1, alpha2=alpha2, margin=margin)
    assert jnp.allclose(loss, ref, rtol=1e-5, atol=1e-5), (loss, ref)

    # Case 2: bf16 embedding storage (half the HBM traffic), f32 compute inside
    # the kernel; auto tile selection (single full block here).
    B2, D2 = 64, 128
    a2 = jax.random.normal(k5, (B2, D2), dtype=jnp.float32).astype(jnp.bfloat16)
    n2 = jax.random.normal(k6, (B2, D2), dtype=jnp.float32).astype(jnp.bfloat16)
    p2 = jax.random.normal(k7, (B2, D2), dtype=jnp.float32).astype(jnp.bfloat16)
    d2 = jax.random.uniform(k8, (B2,), dtype=jnp.float32)

    loss2 = myloss_two(a2, n2, p2, d2, alpha1=0.7, alpha2=0.3, margin=1.0)
    loss2 = jax.block_until_ready(loss2)
    ref2 = _reference(a2, n2, p2, d2, alpha1=0.7, alpha2=0.3, margin=1.0)
    assert jnp.allclose(loss2, ref2, rtol=1e-5, atol=1e-4), (loss2, ref2)

    print("KERNEL_OK")
</pallas_src>

<mosaic_0001>
module attributes {stable_mosaic.version = 11 : i64} {
  func.func @_triplet_sum_kernel(%arg0: i32, %arg1: memref<64x64xf32, #tpu.memory_space<vmem>>, %arg2: memref<64x64xf32, #tpu.memory_space<vmem>>, %arg3: memref<64x64xf32, #tpu.memory_space<vmem>>, %arg4: memref<1x1xf32, #tpu.memory_space<smem>>, %arg5: memref<1x1xf32, #tpu.memory_space<smem>>) attributes {dimension_semantics = [#tpu.dimension_semantics<arbitrary>], iteration_bounds = array<i64: 4>, scalar_prefetch = 0 : i64, scratch_operands = 1 : i64, tpu.core_type = #tpu.core_type<tc>, window_params = [{transform_indices = @transform_0, window_bounds = array<i64: 64, 64>}, {transform_indices = @transform_1, window_bounds = array<i64: 64, 64>}, {transform_indices = @transform_2, window_bounds = array<i64: 64, 64>}, {transform_indices = @transform_3, window_bounds = array<i64: 1, 1>}]} {
    %c0_i32 = arith.constant 0 : i32
    %0 = arith.cmpi eq, %arg0, %c0_i32 : i32
    %1 = arith.extui %0 : i1 to i32
    %c0_i32_0 = arith.constant 0 : i32
    %2 = arith.cmpi ne, %1, %c0_i32_0 : i32
    scf.if %2 {
      %cst_18 = arith.constant 0.000000e+00 : f32
      %c0_19 = arith.constant 0 : index
      %c0_20 = arith.constant 0 : index
      %43 = memref.load %arg5[%c0_19, %c0_20] : memref<1x1xf32, #tpu.memory_space<smem>>
      memref.store %cst_18, %arg5[%c0_19, %c0_20] : memref<1x1xf32, #tpu.memory_space<smem>>
    } else {
    }
    %c0 = arith.constant 0 : index
    %c0_1 = arith.constant 0 : index
    %3 = vector.load %arg1[%c0, %c0_1] : memref<64x64xf32, #tpu.memory_space<vmem>>, vector<64x64xf32>
    %c0_2 = arith.constant 0 : index
    %c0_3 = arith.constant 0 : index
    %4 = vector.load %arg2[%c0_2, %c0_3] : memref<64x64xf32, #tpu.memory_space<vmem>>, vector<64x64xf32>
    %c0_4 = arith.constant 0 : index
    %c0_5 = arith.constant 0 : index
    %5 = vector.load %arg3[%c0_4, %c0_5] : memref<64x64xf32, #tpu.memory_space<vmem>>, vector<64x64xf32>
    %6 = arith.subf %4, %5 : vector<64x64xf32>
    %cst = arith.constant 9.99999997E-7 : f32
    %7 = vector.broadcast %cst : f32 to vector<64x64xf32>
    %8 = arith.addf %6, %7 : vector<64x64xf32>
    %9 = arith.subf %4, %3 : vector<64x64xf32>
    %cst_6 = arith.constant 9.99999997E-7 : f32
    %10 = vector.broadcast %cst_6 : f32 to vector<64x64xf32>
    %11 = arith.addf %9, %10 : vector<64x64xf32>
    %12 = arith.mulf %8, %8 : vector<64x64xf32>
    %cst_7 = arith.constant dense<0.000000e+00> : vector<64xf32>
    %13 = vector.multi_reduction <add>, %12, %cst_7 [1] : vector<64x64xf32> to vector<64xf32>
    %14 = vector.shape_cast %13 : vector<64xf32> to vector<64x1xf32>
    %15 = math.sqrt %14 : vector<64x1xf32>
    %16 = arith.mulf %11, %11 : vector<64x64xf32>
    %cst_8 = arith.constant dense<0.000000e+00> : vector<64xf32>
    %17 = vector.multi_reduction <add>, %16, %cst_8 [1] : vector<64x64xf32> to vector<64xf32>
    %18 = vector.shape_cast %17 : vector<64xf32> to vector<64x1xf32>
    %19 = math.sqrt %18 : vector<64x1xf32>
    %20 = arith.subf %15, %19 : vector<64x1xf32>
    %cst_9 = arith.constant 2.000000e+00 : f32
    %21 = vector.broadcast %cst_9 : f32 to vector<64x1xf32>
    %22 = arith.addf %20, %21 : vector<64x1xf32>
    %cst_10 = arith.constant 0.000000e+00 : f32
    %23 = vector.broadcast %cst_10 : f32 to vector<64x1xf32>
    %24 = arith.maximumf %22, %23 : vector<64x1xf32>
    %c64_i32 = arith.constant 64 : i32
    %25 = arith.muli %arg0, %c64_i32 : i32
    %26 = tpu.iota {dimensions = array<i32: 0>} : vector<64x1xi32>
    %27 = vector.broadcast %25 : i32 to vector<64x1xi32>
    %28 = arith.addi %27, %26 : vector<64x1xi32>
    %c200_i32 = arith.constant 200 : i32
    %29 = vector.broadcast %c200_i32 : i32 to vector<64x1xi32>
    %30 = arith.cmpi slt, %28, %29 : vector<64x1xi32>
    %cst_11 = arith.constant 0.000000e+00 : f32
    %31 = vector.broadcast %cst_11 : f32 to vector<64x1xf32>
    %32 = arith.select %30, %24, %31 : vector<64x1xi1>, vector<64x1xf32>
    %c0_12 = arith.constant 0 : index
    %c0_13 = arith.constant 0 : index
    %33 = memref.load %arg5[%c0_12, %c0_13] : memref<1x1xf32, #tpu.memory_space<smem>>
    %34 = vector.shape_cast %32 : vector<64x1xf32> to vector<1x64x1xf32>
    %cst_14 = arith.constant dense<0.000000e+00> : vector<1xf32>
    %35 = vector.multi_reduction <add>, %34, %cst_14 [1, 2] : vector<1x64x1xf32> to vector<1xf32>
    %36 = vector.shape_cast %35 : vector<1xf32> to vector<1x1x1xf32>
    %37 = vector.extract %36[0, 0, 0] : f32 from vector<1x1x1xf32>
    %38 = arith.addf %33, %37 : f32
    %c0_15 = arith.constant 0 : index
    %c0_16 = arith.constant 0 : index
    %39 = memref.load %arg5[%c0_15, %c0_16] : memref<1x1xf32, #tpu.memory_space<smem>>
    memref.store %38, %arg5[%c0_15, %c0_16] : memref<1x1xf32, #tpu.memory_space<smem>>
    %c3_i32 = arith.constant 3 : i32
    %40 = arith.cmpi eq, %arg0, %c3_i32 : i32
    %41 = arith.extui %40 : i1 to i32
    %c0_i32_17 = arith.constant 0 : i32
    %42 = arith.cmpi ne, %41, %c0_i32_17 : i32
    scf.if %42 {
      %c0_18 = arith.constant 0 : index
      %c0_19 = arith.constant 0 : index
      %43 = memref.load %arg5[%c0_18, %c0_19] : memref<1x1xf32, #tpu.memory_space<smem>>
      %cst_20 = arith.constant 2.000000e+02 : f32
      %44 = arith.divf %43, %cst_20 : f32
      %c0_21 = arith.constant 0 : index
      %c0_22 = arith.constant 0 : index
      %45 = memref.load %arg4[%c0_21, %c0_22] : memref<1x1xf32, #tpu.memory_space<smem>>
      memref.store %44, %arg4[%c0_21, %c0_22] : memref<1x1xf32, #tpu.memory_space<smem>>
    } else {
    }
    return
  }
  func.func @transform_0(%arg0: i32) -> (i32, i32) {
    %c0_i32 = arith.constant 0 : i32
    %c0_i32_0 = arith.constant 0 : i32
    return %arg0, %c0_i32 : i32, i32
  }
  func.func @transform_1(%arg0: i32) -> (i32, i32) {
    %c0_i32 = arith.constant 0 : i32
    %c0_i32_0 = arith.constant 0 : i32
    return %arg0, %c0_i32 : i32, i32
  }
  func.func @transform_2(%arg0: i32) -> (i32, i32) {
    %c0_i32 = arith.constant 0 : i32
    %c0_i32_0 = arith.constant 0 : i32
    return %arg0, %c0_i32 : i32, i32
  }
  func.func @transform_3(%arg0: i32) -> (i32, i32) {
    %c0_i32 = arith.constant 0 : i32
    %c0_i32_0 = arith.constant 0 : i32
    %c0_i32_1 = arith.constant 0 : i32
    return %c0_i32, %c0_i32_0 : i32, i32
  }
}

</mosaic_0001>

<bundles_post_ra>
// kernel: tpu_custom_call.1
= control target key start
LH: loop header
LB: loop body
LE: loop exit
PB: predicated region body
PF: predicated region fallthrough
CT: control target
= control target key end

     0   :  { %8 = vsyncpa [#allocation4], 0  ;;  %s786_s12 = smov 0   ;;  %s1084_s0 = inlined_call_operand.vmem [shape: f32[200,64], index: 0, kind: input, shape index: {}]   ;;  %s1085_s1 = inlined_call_operand.vmem [shape: f32[200,64], index: 1, kind: input, shape index: {}]   ;;  %s1086_s2 = inlined_call_operand.vmem [shape: f32[200,64], index: 2, kind: input, shape index: {}]   ;;  %s1087_s3 = inlined_call_operand.hbm [shape: f32[1,1], index: 3, kind: output, shape index: {}]  }
   0x1 LB: > { %s792_s13 = sadd.s32 4294967295, %s762_s12   ;;  %p672_p0 = scmp.ge.s32.totalorder %s762_s12, 1  ;;  %s762_s12 = sphi %s786_s12, %s14_s12  }
   0x2   : > { %p180_p1 = scmp.lt.s32.totalorder %s762_s12, 5 }
   0x4   : > { %p181_p2 = pnand %p672_p0, %p180_p1 }
   0x5   : > { %s673_s14 = sshll.u32 (!%p181_p2), %s792_s13, 3  ;;  %s680_s25 = sshll.u32 (!%p181_p2), %s792_s13, 6 }
   0x6   : > { %184 = sbr.rel (%p181_p2) target bundleno = 427 (0x1ab), region = 32  ;;  %p226_p3 = scmp.lt.s32.totalorder (!%p181_p2), %s673_s14, 24 }
   0x7   : > { %p696_p4 = scmp.eq.s32.totalorder (!%p181_p2), %s792_s13, 0  ;;  %s764_s26 = smov (!%p181_p2), 0.0  }
   0x8   : > { %p697_p5 = scmp.eq.s32.totalorder (!%p181_p2), %s792_s13, 3  ;;  %s765_s4 = smov (!%p181_p2), [#allocation3]  }
   0xb   : > { %s1089_s14 = smov (!%p226_p3, %s673_s14), 24  ;;  %vm333_vm0 = vcmask 523264   ;;  %689 = sst [smem:[#allocation2]] (%p696_p4), %s764_s26 }
   0xc   : > { %s674_s15 = sshll.u32 %s1089_s14, 3  ;;  %s561_s27 = sld [smem:[#allocation2]] }
   0xd   : > { %s800_s18 = scalar_lea.vmem %s1085_s1, %s674_s15  ;;  %s805_s21 = scalar_lea.vmem %s1086_s2, %s674_s15 }
   0xe   : > { %v277_v0 = vld [vmem:[%s800_s18] sm:$0xff]  ;;  %s812_s24 = scalar_lea.vmem %s1084_s0, %s674_s15  ;;  %v278_v2 = vld [vmem:[%s800_s18 + $0x8] sm:$0xff]  ;;  %v279_v10 = vld [vmem:[%s800_s18 + $0x10] sm:$0xff] }
   0xf   : > { %v285_v1 = vld [vmem:[%s805_s21] sm:$0xff]  ;;  %v286_v5 = vld [vmem:[%s805_s21 + $0x8] sm:$0xff]  ;;  %v287_v11 = vld [vmem:[%s805_s21 + $0x10] sm:$0xff] }
  0x10   : > { %v293_v3 = vsub.f32 %v277_v0, %v285_v1  ;;  %v269_v4 = vld [vmem:[%s812_s24] sm:$0xff]  ;;  %v270_v6 = vld [vmem:[%s812_s24 + $0x8] sm:$0xff]  ;;  %v294_v8 = vsub.f32 %v278_v2, %v286_v5  ;;  %v271_v12 = vld [vmem:[%s812_s24 + $0x10] sm:$0xff]  ;;  %v295_v14 = vsub.f32 %v279_v10, %v287_v11 }
  0x11   : > { %v309_v7 = vsub.f32 %v277_v0, %v269_v4  ;;  %v310_v9 = vsub.f32 %v278_v2, %v270_v6  ;;  %v311_v15 = vsub.f32 %v279_v10, %v271_v12  ;;  %v280_v16 = vld [vmem:[%s800_s18 + $0x18] sm:$0xff]  ;;  %v281_v30 = vld [vmem:[%s800_s18 + $0x20] sm:$0xff]  ;;  %v282_v43 = vld [vmem:[%s800_s18 + $0x28] sm:$0xff] }
  0x12   : > { %v301_v13 = vadd.f32 1e-06, %v293_v3  ;;  %v288_v17 = vld [vmem:[%s805_s21 + $0x18] sm:$0xff]  ;;  %v302_v20 = vadd.f32 1e-06, %v294_v8  ;;  %v289_v31 = vld [vmem:[%s805_s21 + $0x20] sm:$0xff] }
  0x13   : > { %v272_v18 = vld [vmem:[%s812_s24 + $0x18] sm:$0xff]  ;;  %v317_v19 = vadd.f32 1e-06, %v309_v7  ;;  %v318_v21 = vadd.f32 1e-06, %v310_v9  ;;  %v296_v25 = vsub.f32 %v280_v16, %v288_v17  ;;  %v273_v33 = vld [vmem:[%s812_s24 + $0x20] sm:$0xff]  ;;  %v297_v38 = vsub.f32 %v281_v30, %v289_v31 }
  0x14   : > { %v325_v22 = vmul.f32 %v301_v13, %v301_v13  ;;  %v303_v23 = vadd.f32 1e-06, %v295_v14  ;;  %v319_v24 = vadd.f32 1e-06, %v311_v15  ;;  %v326_v27 = vmul.f32 %v302_v20, %v302_v20  ;;  %v290_v44 = vld [vmem:[%s805_s21 + $0x28] sm:$0xff]  ;;  %v283_v54 = vld [vmem:[%s800_s18 + $0x30] sm:$0xff] }
  0x15   : > { %v414_v26 = vmul.f32 %v317_v19, %v317_v19  ;;  %v415_v28 = vmul.f32 %v318_v21, %v318_v21  ;;  %v312_v29 = vsub.f32 %v280_v16, %v272_v18  ;;  %v304_v37 = vadd.f32 1e-06, %v296_v25  ;;  %v274_v45 = vld [vmem:[%s812_s24 + $0x28] sm:$0xff]  ;;  %v291_v55 = vld [vmem:[%s805_s21 + $0x30] sm:$0xff]  ;;  %v284_v1 = vld [vmem:[%s800_s18 + $0x38] sm:$0xff] }
  0x16   : > { %v334_v32 = vsel %vm333_vm0, %v325_v22, 0.0  ;;  %v337_v35 = vsel %vm333_vm0, %v326_v27, 0.0  ;;  %v327_v36 = vmul.f32 %v303_v23, %v303_v23  ;;  %v416_v40 = vmul.f32 %v319_v24, %v319_v24  ;;  %v275_v56 = vld [vmem:[%s812_s24 + $0x30] sm:$0xff]  ;;  %v292_v2 = vld [vmem:[%s805_s21 + $0x38] sm:$0xff] }
  0x17   : > { %335 = vadd.xlane.f32.xlu0 %v334_v32  ;;  %v422_v34 = vsel %vm333_vm0, %v414_v26, 0.0  ;;  %v425_v39 = vsel %vm333_vm0, %v415_v28, 0.0  ;;  %v320_v41 = vadd.f32 1e-06, %v312_v29  ;;  %v313_v42 = vsub.f32 %v281_v30, %v273_v33  ;;  %v276_v3 = vld [vmem:[%s812_s24 + $0x38] sm:$0xff] }
  0x18   : > { %423 = vadd.xlane.f32.xlu1 %v422_v34  ;;  %v340_v46 = vsel %vm333_vm0, %v327_v36, 0.0  ;;  %v328_v47 = vmul.f32 %v304_v37, %v304_v37  ;;  %v305_v48 = vadd.f32 1e-06, %v297_v38  ;;  %v298_v49 = vsub.f32 %v282_v43, %v290_v44 }
  0x19   : > { %v428_v50 = vsel %vm333_vm0, %v416_v40, 0.0  ;;  %v417_v51 = vmul.f32 %v320_v41, %v320_v41  ;;  %v321_v52 = vadd.f32 1e-06, %v313_v42  ;;  %v314_v53 = vsub.f32 %v282_v43, %v274_v45 }
  0x1a   : > { %v343_v57 = vsel %vm333_vm0, %v328_v47, 0.0  ;;  %v329_v58 = vmul.f32 %v305_v48, %v305_v48  ;;  %v306_v59 = vadd.f32 1e-06, %v298_v49  ;;  %v299_v60 = vsub.f32 %v283_v54, %v291_v55 }
  0x1b   : > { %338 = vadd.xlane.f32.xlu0 %v337_v35  ;;  %v431_v61 = vsel %vm333_vm0, %v417_v51, 0.0  ;;  %v418_v62 = vmul.f32 %v321_v52, %v321_v52  ;;  %v322_v63 = vadd.f32 1e-06, %v314_v53  ;;  %v315_v0 = vsub.f32 %v283_v54, %v275_v56 }
  0x1c   : > { %426 = vadd.xlane.f32.xlu1 %v425_v39  ;;  %v346_v4 = vsel %vm333_vm0, %v329_v58, 0.0  ;;  %v330_v5 = vmul.f32 %v306_v59, %v306_v59  ;;  %v307_v6 = vadd.f32 1e-06, %v299_v60  ;;  %v300_v7 = vsub.f32 %v284_v1, %v292_v2 }
  0x1d   : > { %v434_v8 = vsel %vm333_vm0, %v418_v62, 0.0  ;;  %v419_v9 = vmul.f32 %v322_v63, %v322_v63  ;;  %v323_v10 = vadd.f32 1e-06, %v315_v0  ;;  %v316_v11 = vsub.f32 %v284_v1, %v276_v3 }
  0x1e   : > { %v349_v12 = vsel %vm333_vm0, %v330_v5, 0.0  ;;  %v331_v13 = vmul.f32 %v307_v6, %v307_v6  ;;  %v308_v14 = vadd.f32 1e-06, %v300_v7  ;;  %v527_v26 = vlaneseq }
  0x1f   : > { %341 = vadd.xlane.f32.xlu0 %v340_v46  ;;  %v437_v15 = vsel %vm333_vm0, %v419_v9, 0.0  ;;  %v420_v16 = vmul.f32 %v323_v10, %v323_v10  ;;  %v324_v17 = vadd.f32 1e-06, %v316_v11  ;;  %v536_v31 = vstv %s680_s25 }
  0x20   : > { %429 = vadd.xlane.f32.xlu1 %v428_v50  ;;  %v352_v18 = vsel %vm333_vm0, %v331_v13, 0.0  ;;  %v332_v19 = vmul.f32 %v308_v14, %v308_v14  ;;  %v528_v29 = vshrl.u32 %v527_v26, 7 }
  0x21   : > { %v440_v20 = vsel %vm333_vm0, %v420_v16, 0.0  ;;  %v421_v21 = vmul.f32 %v324_v17, %v324_v17 }
  0x22   : > { %v355_v22 = vsel %vm333_vm0, %v332_v19, 0.0  ;;  %v529_v30 = vadd.s32 8, %v528_v29  ;;  %v530_v33 = vadd.s32 16, %v528_v29  ;;  %v531_v34 = vadd.s32 24, %v528_v29 }
  0x23   : > { %344 = vadd.xlane.f32.xlu0 %v343_v57  ;;  %v443_v23 = vsel %vm333_vm0, %v421_v21, 0.0  ;;  %v532_v35 = vadd.s32 32, %v528_v29  ;;  %v533_v36 = vadd.s32 40, %v528_v29  ;;  %v534_v38 = vadd.s32 48, %v528_v29 }
  0x24   : > { %432 = vadd.xlane.f32.xlu1 %v431_v61  ;;  %v535_v39 = vadd.s32 56, %v528_v29  ;;  %v868_v40 = vadd.s32 %v536_v31, %v528_v29  ;;  %v870_v41 = vadd.s32 %v536_v31, %v529_v30  ;;  %v874_v43 = vadd.s32 %v536_v31, %v530_v33 }
  0x25   : > { %v876_v44 = vadd.s32 %v536_v31, %v531_v34  ;;  %v878_v45 = vadd.s32 %v536_v31, %v532_v35  ;;  %v880_v46 = vadd.s32 %v536_v31, %v533_v36  ;;  %v886_v48 = vadd.s32 %v536_v31, %v534_v38 }
  0x26   : > { %v888_v49 = vadd.s32 %v536_v31, %v535_v39 }
  0x27   : > { %347 = vadd.xlane.f32.xlu0 %v346_v4 }
  0x28   : > { %435 = vadd.xlane.f32.xlu1 %v434_v8 }
  0x2b   : > { %350 = vadd.xlane.f32.xlu0 %v349_v12 }
  0x2c   : > { %438 = vadd.xlane.f32.xlu1 %v437_v15 }
  0x2f   : > { %353 = vadd.xlane.f32.xlu0 %v352_v18 }
  0x30   : > { %441 = vadd.xlane.f32.xlu1 %v440_v20 }
  0x33   : > { %356 = vadd.xlane.f32.xlu0 %v355_v22 }
  0x34   : > { %444 = vadd.xlane.f32.xlu1 %v443_v23 }
  0xa0   : > { %v852_v24 = vpop.xlane.xlu0 %335 }
  0xa1   : > { %710 = vrsqrt.f32 %v852_v24  ;;  %v424_v25 = vpop.xlane.xlu1 %423  ;;  %vm360_vm1 = vcmp.eq.f32.partialorder %v852_v24, inf  ;;  %vm362_vm2 = vcmp.eq.f32.partialorder %v852_v24, 0.0  ;;  %v363_v51 = vand.u32 2147483648, %v852_v24 }
  0xa2   : > { %712 = vrsqrt.f32 %v424_v25  ;;  %vm448_vm3 = vcmp.eq.f32.partialorder %v424_v25, inf  ;;  %vm450_vm4 = vcmp.eq.f32.partialorder %v424_v25, 0.0  ;;  %v451_v54 = vand.u32 2147483648, %v424_v25 }
  0xa4   : > { %v855_v27 = vpop.xlane.xlu0 %338 }
  0xa5   : > { %714 = vrsqrt.f32 %v855_v27  ;;  %v859_v28 = vpop.xlane.xlu1 %426  ;;  %vm367_vm5 = vcmp.eq.f32.partialorder %v855_v27, inf  ;;  %vm369_vm6 = vcmp.eq.f32.partialorder %v855_v27, 0.0  ;;  %v370_v56 = vand.u32 2147483648, %v855_v27 }
  0xa6   : > { %716 = vrsqrt.f32 %v859_v28  ;;  %vm455_vm7 = vcmp.eq.f32.partialorder %v859_v28, inf  ;;  %vm457_vm8 = vcmp.eq.f32.partialorder %v859_v28, 0.0  ;;  %v458_v59 = vand.u32 2147483648, %v859_v28 }
  0xa8   : > { %v862_v32 = vpop.xlane.xlu0 %341 }
  0xa9   : > { %718 = vrsqrt.f32 %v862_v32  ;;  %v865_v37 = vpop.xlane.xlu1 %429  ;;  %vm374_vm9 = vcmp.eq.f32.partialorder %v862_v32, inf  ;;  %vm376_vm10 = vcmp.eq.f32.partialorder %v862_v32, 0.0  ;;  %v377_v3 = vand.u32 2147483648, %v862_v32 }
  0xaa   : > { %720 = vrsqrt.f32 %v865_v37  ;;  %vm462_vm11 = vcmp.eq.f32.partialorder %v865_v37, inf  ;;  %vm464_vm12 = vcmp.eq.f32.partialorder %v865_v37, 0.0  ;;  %v465_v5 = vand.u32 2147483648, %v865_v37 }
  0xac   : > { %v872_v42 = vpop.xlane.xlu0 %344 }
  0xad   : > { %722 = vrsqrt.f32 %v872_v42  ;;  %v884_v47 = vpop.xlane.xlu1 %432  ;;  %vm381_vm13 = vcmp.eq.f32.partialorder %v872_v42, inf  ;;  %vm383_vm14 = vcmp.eq.f32.partialorder %v872_v42, 0.0  ;;  %v384_v12 = vand.u32 2147483648, %v872_v42 }
  0xae   : > { %v711_v50 = vpop.eup %710  ;;  %724 = vrsqrt.f32 %v884_v47  ;;  %vm469_vm15 = vcmp.eq.f32.partialorder %v884_v47, inf  ;;  %vm471_vm0 = vcmp.eq.f32.partialorder %v884_v47, 0.0  ;;  %v472_v18 = vand.u32 2147483648, %v884_v47 }
  0xaf   : > { %v713_v52 = vpop.eup %712  ;;  %v359_v53 = vmul.f32 %v711_v50, %v852_v24 }
  0xb0   : > { %v447_v55 = vmul.f32 %v713_v52, %v424_v25  ;;  %v898_v57 = vpop.xlane.xlu0 %347 }
  0xb1   : > { %v361_v58 = vsel %vm360_vm1, %v852_v24, %v359_v53  ;;  %726 = vrsqrt.f32 %v898_v57  ;;  %v906_v60 = vpop.xlane.xlu1 %435  ;;  %vm388_vm1 = vcmp.eq.f32.partialorder %v898_v57, inf  ;;  %v391_v21 = vand.u32 2147483648, %v898_v57 }
  0xb2   : > { %v715_v61 = vpop.eup %714  ;;  %v449_v62 = vsel %vm448_vm3, %v424_v25, %v447_v55  ;;  %728 = vrsqrt.f32 %v906_v60  ;;  %v364_v0 = vsel %vm362_vm2, %v363_v51, %v361_v58  ;;  %vm390_vm2 = vcmp.eq.f32.partialorder %v898_v57, 0.0 }
  0xb3   : > { %v717_v63 = vpop.eup %716  ;;  %v452_v1 = vsel %vm450_vm4, %v451_v54, %v449_v62  ;;  %v366_v2 = vmul.f32 %v715_v61, %v855_v27  ;;  %vm476_vm3 = vcmp.eq.f32.partialorder %v906_v60, inf  ;;  %vm478_vm4 = vcmp.eq.f32.partialorder %v906_v60, 0.0 }
  0xb4   : > { %v454_v4 = vmul.f32 %v717_v63, %v859_v28  ;;  %v921_v6 = vpop.xlane.xlu0 %350  ;;  %v502_v10 = vsub.f32 %v364_v0, %v452_v1  ;;  %v479_v33 = vand.u32 2147483648, %v906_v60 }
  0xb5   : > { %v368_v7 = vsel %vm367_vm5, %v855_v27, %v366_v2  ;;  %730 = vrsqrt.f32 %v921_v6  ;;  %v929_v8 = vpop.xlane.xlu1 %438  ;;  %vm546_vm5 = vcmp.lt.s32.totalorder %v870_v41, 200  ;;  %v398_v36 = vand.u32 2147483648, %v921_v6 }
  0xb6   : > { %v719_v9 = vpop.eup %718  ;;  %v456_v11 = vsel %vm455_vm7, %v859_v28, %v454_v4  ;;  %v371_v14 = vsel %vm369_vm6, %v370_v56, %v368_v7  ;;  %732 = vrsqrt.f32 %v929_v8  ;;  %v963_v28 = vadd.f32 2.0, %v502_v10 }
  0xb7   : > { %v721_v13 = vpop.eup %720  ;;  %v459_v15 = vsel %vm457_vm8, %v458_v59, %v456_v11  ;;  %v373_v16 = vmul.f32 %v719_v9, %v862_v32  ;;  %vm395_vm6 = vcmp.eq.f32.partialorder %v921_v6, inf  ;;  %vm545_vm7 = vcmp.lt.s32.totalorder %v868_v40, 200 }
  0xb8   : > { %v461_v17 = vmul.f32 %v721_v13, %v865_v37  ;;  %v946_v19 = vpop.xlane.xlu0 %353  ;;  %v503_v24 = vsub.f32 %v371_v14, %v459_v15  ;;  %vm397_vm8 = vcmp.eq.f32.partialorder %v921_v6, 0.0  ;;  %v518_v53 = vmax.f32 %v963_v28, 0.0 }
  0xb9   : > { %v375_v20 = vsel %vm374_vm9, %v862_v32, %v373_v16  ;;  %734 = vrsqrt.f32 %v946_v19  ;;  %v955_v22 = vpop.xlane.xlu1 %441  ;;  %vm547_vm9 = vcmp.lt.s32.totalorder %v874_v43, 200  ;;  %v486_v58 = vand.u32 2147483648, %v929_v8 }
  0xba   : > { %v723_v23 = vpop.eup %722  ;;  %v378_v25 = vsel %vm376_vm10, %v377_v3, %v375_v20  ;;  %v463_v26 = vsel %vm462_vm11, %v865_v37, %v461_v17  ;;  %736 = vrsqrt.f32 %v955_v22  ;;  %v511_v39 = vadd.f32 2.0, %v503_v24 }
  0xbb   : > { %v725_v27 = vpop.eup %724  ;;  %v466_v29 = vsel %vm464_vm12, %v465_v5, %v463_v26  ;;  %v380_v30 = vmul.f32 %v723_v23, %v872_v42  ;;  %vm483_vm10 = vcmp.eq.f32.partialorder %v929_v8, inf  ;;  %vm548_vm11 = vcmp.lt.s32.totalorder %v876_v44, 200 }
  0xbc   : > { %v504_v31 = vsub.f32 %v378_v25, %v466_v29  ;;  %v468_v32 = vmul.f32 %v725_v27, %v884_v47  ;;  %v973_v34 = vpop.xlane.xlu0 %356  ;;  %vm562_vm12 = vcmask 7168   ;;  %v519_v63 = vmax.f32 %v511_v39, 0.0 }
  0xbd   : > { %v382_v35 = vsel %vm381_vm13, %v872_v42, %v380_v30  ;;  %738 = vrsqrt.f32 %v973_v34  ;;  %v982_v37 = vpop.xlane.xlu1 %444  ;;  %vm485_vm13 = vcmp.eq.f32.partialorder %v929_v8, 0.0  ;;  %v493_v3 = vand.u32 2147483648, %v955_v22 }
  0xbe   : > { %v727_v38 = vpop.eup %726  ;;  %v385_v50 = vsel %vm383_vm14, %v384_v12, %v382_v35  ;;  %v470_v51 = vsel %vm469_vm15, %v884_v47, %v468_v32  ;;  %740 = vrsqrt.f32 %v982_v37  ;;  %v512_v42 = vadd.f32 2.0, %v504_v31 }
  0xbf   : > { %v729_v52 = vpop.eup %728  ;;  %v473_v54 = vsel %vm471_vm0, %v472_v18, %v470_v51  ;;  %v387_v55 = vmul.f32 %v727_v38, %v898_v57  ;;  %vm402_vm14 = vcmp.eq.f32.partialorder %v946_v19, inf  ;;  %v405_v47 = vand.u32 2147483648, %v946_v19 }
  0xc0   : > { %v475_v56 = vmul.f32 %v729_v52, %v906_v60  ;;  %v505_v61 = vsub.f32 %v385_v50, %v473_v54  ;;  %vm549_vm15 = vcmp.lt.s32.totalorder %v878_v45, 200  ;;  %vm490_vm0 = vcmp.eq.f32.partialorder %v955_v22, inf }
  0xc1   : > { %v389_v59 = vsel %vm388_vm1, %v898_v57, %v387_v55  ;;  %vm409_vm1 = vcmp.eq.f32.partialorder %v973_v34, inf  ;;  %v412_v9 = vand.u32 2147483648, %v973_v34  ;;  %v520_v11 = vmax.f32 %v512_v42, 0.0 }
  0xc2   : > { %v731_v62 = vpop.eup %730  ;;  %v477_v0 = vsel %vm476_vm3, %v906_v60, %v475_v56  ;;  %v392_v1 = vsel %vm390_vm2, %v391_v21, %v389_v59  ;;  %v513_v5 = vadd.f32 2.0, %v505_v61  ;;  %vm550_vm3 = vcmp.lt.s32.totalorder %v880_v46, 200 }
  0xc3   : > { %v394_v2 = vmul.f32 %v731_v62, %v921_v6  ;;  %v480_v4 = vsel %vm478_vm4, %v479_v33, %v477_v0  ;;  %v733_v7 = vpop.eup %732  ;;  %vm497_vm2 = vcmp.eq.f32.partialorder %v982_v37, inf  ;;  %v500_v60 = vand.u32 2147483648, %v982_v37 }
  0xc4   : > { %v506_v10 = vsub.f32 %v392_v1, %v480_v4  ;;  %v482_v12 = vmul.f32 %v733_v7, %v929_v8  ;;  %v521_v16 = vmax.f32 %v513_v5, 0.0  ;;  %v554_v17 = vsel %vm546_vm5, %v519_v63, 0.0 }
  0xc5   : > { %v396_v57 = vsel %vm395_vm6, %v921_v6, %v394_v2  ;;  %vm404_vm4 = vcmp.eq.f32.partialorder %v946_v19, 0.0  ;;  %v553_v21 = vsel %vm545_vm7, %v518_v53, 0.0  ;;  %vm411_vm6 = vcmp.eq.f32.partialorder %v973_v34, 0.0 }
  0xc6   : > { %v735_v13 = vpop.eup %734  ;;  %v399_v14 = vsel %vm397_vm8, %v398_v36, %v396_v57  ;;  %v514_v15 = vadd.f32 2.0, %v506_v10  ;;  %v484_v18 = vsel %vm483_vm10, %v929_v8, %v482_v12  ;;  %v555_v41 = vsel %vm547_vm9, %v520_v11, 0.0 }
  0xc7   : > { %v401_v20 = vmul.f32 %v735_v13, %v946_v19  ;;  %v737_v23 = vpop.eup %736  ;;  %v487_v6 = vsel %vm485_vm13, %v486_v58, %v484_v18  ;;  %v564_v40 = vsel %vm562_vm12, %v554_v17, 0.0  ;;  %vm492_vm5 = vcmp.eq.f32.partialorder %v955_v22, 0.0 }
  0xc8   : > { %v522_v24 = vmax.f32 %v514_v15, 0.0  ;;  %v489_v25 = vmul.f32 %v737_v23, %v955_v22  ;;  %v507_v27 = vsub.f32 %v399_v14, %v487_v6  ;;  %v556_v8 = vsel %vm548_vm11, %v521_v16, 0.0 }
  0xc9   : > { %v403_v26 = vsel %vm402_vm14, %v946_v19, %v401_v20  ;;  %v563_v30 = vsel %vm562_vm12, %v553_v21, 0.0  ;;  %v566_v33 = vsel %vm562_vm12, %v555_v41, 0.0  ;;  %v568_v52 = vsel %vm562_vm12, %v556_v8, 0.0 }
  0xca   : > { %v739_v28 = vpop.eup %738  ;;  %v406_v29 = vsel %vm404_vm4, %v405_v47, %v403_v26  ;;  %v491_v32 = vsel %vm490_vm0, %v955_v22, %v489_v25  ;;  %v515_v19 = vadd.f32 2.0, %v507_v27  ;;  %v557_v38 = vsel %vm549_vm15, %v522_v24, 0.0 }
  0xcb   : > { %v741_v43 = vpop.eup %740  ;;  %v408_v31 = vmul.f32 %v739_v28, %v973_v34  ;;  %v494_v36 = vsel %vm492_vm5, %v493_v3, %v491_v32  ;;  %v565_v44 = vadd.f32 %v564_v40, %v563_v30  ;;  %vm499_vm7 = vcmp.eq.f32.partialorder %v982_v37, 0.0 }
  0xcc   : > { %v496_v35 = vmul.f32 %v741_v43, %v982_v37  ;;  %v508_v50 = vsub.f32 %v406_v29, %v494_v36  ;;  %v523_v51 = vmax.f32 %v515_v19, 0.0  ;;  %v570_v56 = vsel %vm562_vm12, %v557_v38, 0.0 }
  0xcd   : > { %v410_v39 = vsel %vm409_vm1, %v973_v34, %v408_v31  ;;  %v567_v45 = vadd.f32 %v566_v33, %v565_v44  ;;  %vm551_vm8 = vcmp.lt.s32.totalorder %v886_v48, 200  ;;  %vm552_vm9 = vcmp.lt.s32.totalorder %v888_v49, 200 }
  0xce   : > { %v498_v22 = vsel %vm497_vm2, %v982_v37, %v496_v35  ;;  %v413_v53 = vsel %vm411_vm6, %v412_v9, %v410_v39  ;;  %v516_v55 = vadd.f32 2.0, %v508_v50  ;;  %v558_v42 = vsel %vm550_vm3, %v523_v51, 0.0 }
  0xcf   : > { %v501_v54 = vsel %vm499_vm7, %v500_v60, %v498_v22  ;;  %v569_v59 = vadd.f32 %v568_v52, %v567_v45  ;;  %v572_v61 = vsel %vm562_vm12, %v558_v42, 0.0 }
  0xd0   : > { %v509_v58 = vsub.f32 %v413_v53, %v501_v54  ;;  %v524_v47 = vmax.f32 %v516_v55, 0.0 }
  0xd1   : > { %v571_v62 = vadd.f32 %v570_v56, %v569_v59 }
  0xd2   : > { %v517_v37 = vadd.f32 2.0, %v509_v58  ;;  %v559_v34 = vsel %vm551_vm8, %v524_v47, 0.0 }
  0xd3   : > { %v573_v0 = vadd.f32 %v572_v61, %v571_v62  ;;  %v574_v46 = vsel %vm562_vm12, %v559_v34, 0.0 }
  0xd4   : > { %v525_v63 = vmax.f32 %v517_v37, 0.0 }
  0xd5   : > { %v575_v2 = vadd.f32 %v574_v46, %v573_v0 }
  0xd6   : > { %v560_v1 = vsel %vm552_vm9, %v525_v63, 0.0 }
  0xd7   : > { %v576_v3 = vsel %vm562_vm12, %v560_v1, 0.0 }
  0xd8   : > { %v577_v4 = vadd.f32 %v576_v3, %v575_v2 }
  0xda   : > { %578 = vadd.xlane.f32.xlu0 %v577_v4 }
 0x163   : > { %v579_v48 = vpop.xlane.xlu0 %578 }
 0x164   : > { %v580_v5 = vrot.slane %v579_v48, 4 }
 0x166   : > { %v581_v7 = vadd.f32 %v580_v5, %v579_v48 }
 0x168   : > { %v582_v9 = vrot.slane %v581_v7, 2 }
 0x16a   : > { %v583_v49 = vadd.f32 %v582_v9, %v581_v7 }
 0x16c   : > { %v584_v10 = vrot.slane %v583_v49, 1 }
 0x16e   : > { %v585_v11 = vadd.f32 %v584_v10, %v583_v49 }
 0x170   : > { %686 = vpush %v585_v11 }
 0x1a1   : > { %s687_s28 = spop %686 }
 0x1a2   : > { %s587_s29 = sadd.f32 %s687_s28, %s561_s27 }
 0x1a4   : > { %589 = sst [smem:[#allocation2]] %s587_s29  ;;  %s597_s30 = smul.f32 0.005, %s587_s29 }
 0x1a6   : > { %691 = sst [smem:[#allocation3]] (%p697_p5), %s597_s30 }
 0x1a7   : > { %693 = dma.smem_to_hbm (%p697_p5), %s765_s4, 16, %s1087_s3, [#allocation4]  }
 0x1a8   : > { %757 = dma.done.wait (%p697_p5), [#allocation4], 16  }
 0x1a9   : > { %759 = vsyncadd (%p697_p5), [#allocation4], 4294967280 }
 0x1aa   : > { %613 = sfence }
 0x1ab PF: > { %s14_s12 = sadd.s32 1, %s762_s12  }
 0x1ac   : > { %p11_p6 = scmp.ge.s32.totalorder %s14_s12, 6  }
 0x1ae   :  { %13 = sbr.rel (!%p11_p6) target bundleno = 1 (0x1), region = 76 }
 0x1b3   :  { %619 = vsyncpa [#allocation4], 1 }
 0x1b4   :  { %621 = vsyncpa [#allocation4 + $0x1], 1 }

</bundles_post_ra>
